<compile_context>
chip_gen: v6e
topology: v6e:2x2x1
jax: 0.10.0
libtpu: 0.0.40
codegen_flags: <defaults>
</compile_context>

<pallas_src>
import jax
import jax.numpy as jnp
from jax import lax
from jax.experimental import pallas as pl
from jax.experimental.pallas import tpu as pltpu


def _round_up(v, m):
    return ((v + m - 1) // m) * m


def _device_kind():
    try:
        return jax.devices()[0].device_kind.lower()
    except Exception:
        return ""


def _gen_flags():
    kind = _device_kind()
    is_v7 = ("v7" in kind) or ("7x" in kind)
    is_v6 = "v6" in kind
    is_v5 = "v5" in kind
    return is_v5, is_v6, is_v7


def _default_vmem_limit_bytes(is_v5, is_v6, is_v7):
    """Generation-aware scoped-VMEM limit (leaves headroom for compiler scratch)."""
    cap = None
    try:
        cap = int(pltpu.get_tpu_info().vmem_capacity_bytes)
    except Exception:
        cap = None
    if cap is None:
        if is_v7:
            cap = 64 * 1024 * 1024          # v7x: 64 MiB physical per TC
        elif is_v5 or is_v6:
            cap = 128 * 1024 * 1024         # v5e/v6e: 128 MiB physical
        else:
            cap = 64 * 1024 * 1024          # unknown: be conservative
    # 3/4 of physical, clamped: ~96 MiB on v5e/v6e, ~48 MiB on v7x.
    return min(int(0.75 * cap), 96 * 1024 * 1024)


# ---------------------------------- kernels ----------------------------------

def _head_kernel_single_k(x_ref, w_ref, b_ref, o_ref):
    # x_ref: (tb, D_pad)   activations (original dtype; cast in-kernel)
    # w_ref: (D_pad, to)   pre-transposed weight (compute dtype) -- VMEM resident
    # b_ref: (1, to)       bias, f32
    # o_ref: (tb, to)      output tile
    x = x_ref[...].astype(w_ref.dtype)
    acc = jnp.dot(x, w_ref[...], preferred_element_type=jnp.float32)
    o_ref[...] = (acc + b_ref[...]).astype(o_ref.dtype)


def _head_kernel_multi_k(x_ref, w_ref, b_ref, o_ref, acc_ref):
    # K-tiled fallback: grid = (batch, o, k), reduction axis last ("arbitrary").
    k = pl.program_id(2)
    x = x_ref[...].astype(w_ref.dtype)
    part = jnp.dot(x, w_ref[...], preferred_element_type=jnp.float32)

    @pl.when(k == 0)
    def _():
        acc_ref[...] = part + b_ref[...]      # init with dot + bias (no zero-fill)

    @pl.when(k > 0)
    def _():
        acc_ref[...] += part

    @pl.when(k == pl.num_programs(2) - 1)
    def _():
        o_ref[...] = acc_ref[...].astype(o_ref.dtype)


# ---------------------------------- wrapper ----------------------------------

def classification_head(
    x,
    weight,
    bias,
    *,
    tile_b=512,
    compute_dtype=None,
    vmem_limit_bytes=None,
    force_pallas=False,
):
    """Pallas equivalent of nn.Linear(input_dim, out_dim, bias=True).

    x:      (B, D)   activations
    weight: (O, D)   PyTorch layout [out_features, in_features]
    bias:   (O,)
    returns (B, O) in x.dtype
    """
    B, D = x.shape
    O = weight.shape[0]
    out_dtype = x.dtype
    is_v5, is_v6, is_v7 = _gen_flags()

    # Tiny problems: padding copies + pallas_call dispatch cost more than the op.
    if not force_pallas and 2 * B * D * O < (1 << 21):
        return (x @ weight.T + bias).astype(out_dtype)

    if compute_dtype is None:
        # bf16 MXU fast path + half the weight HBM bytes on v6e/v7x.
        compute_dtype = jnp.bfloat16 if (is_v6 or is_v7) else out_dtype
    cdt = jnp.dtype(compute_dtype)

    if vmem_limit_bytes is None:
        vmem_limit_bytes = _default_vmem_limit_bytes(is_v5, is_v6, is_v7)
    budget = int(0.75 * vmem_limit_bytes)     # headroom: double-buffers + scratch

    x_it = jnp.dtype(x.dtype).itemsize
    w_it = cdt.itemsize
    out_it = jnp.dtype(out_dtype).itemsize

    sub = 8                                   # sublane min (x / out stay f32)
    k_align = 256 if (is_v6 or is_v7) else 128  # feed K in 256-deep slabs on 2x256^2 MXU

    # ---- weight tile (tk, to): prefer full-D single K tile; tile O first ------
    # Estimate charges 2x per block (default double-buffering).
    # TODO(synk): pipeline_mode=pl.Buffered(1) on W/bias when their block index is
    # constant would halve the resident-weight footprint (most valuable on v7x).
    tk = _round_up(D, k_align)
    to = _round_up(O, 128)
    w_budget = budget // 2                    # keep >= half the budget for x/out/acc

    def w_bytes(tk_, to_):
        return 2 * tk_ * to_ * w_it

    while to > 128 and w_bytes(tk, to) > w_budget:
        to = max(128, _round_up(to // 2, 128))
    while tk > k_align and w_bytes(tk, to) > w_budget:
        tk = max(k_align, _round_up(tk // 2, k_align))

    D_pad = _round_up(D, tk)
    O_pad = _round_up(O, to)
    k_tiles = D_pad // tk
    o_tiles = O_pad // to

    # ---- batch tile ------------------------------------------------------------
    def vmem_estimate(tb_):
        e = (2 * tb_ * tk * x_it             # x tile (double-buffered, stays f32)
             + w_bytes(tk, to)               # weight tile (double-buffered)
             + 2 * to * 4                    # bias
             + 2 * tb_ * to * out_it)        # output tile (double-buffered)
        if k_tiles > 1:
            e += tb_ * to * 4                # f32 accumulator scratch
        return e

    tb = _round_up(min(tile_b, _round_up(B, sub)), sub)
    while tb > sub and vmem_estimate(tb) > budget:
        tb = max(sub, _round_up(tb // 2, sub))
    if is_v7 and _round_up(B, sub) >= 2 * sub:
        # >= 2 batch tiles so the "parallel" axis shards across both TensorCores.
        tb = min(tb, max(sub, _round_up(_round_up(B, sub) // 2, sub)))

    B_pad = _round_up(B, tb)
    batch_tiles = B_pad // tb

    # ---- pad / prep operands (weight transpose+cast = one-time param prep) ----
    x_p = x
    if B_pad != B or D_pad != D:
        x_p = jnp.pad(x, ((0, B_pad - B), (0, D_pad - D)))   # zero K-pad: no-op in dot
    w_t = weight.T                                           # (D, O) -> NN contraction
    if D_pad != D or O_pad != O:
        w_t = jnp.pad(w_t, ((0, D_pad - D), (0, O_pad - O)))
    w_p = w_t.astype(cdt)
    b_p = bias if O_pad == O else jnp.pad(bias, (0, O_pad - O))
    b2d = b_p.reshape(1, O_pad).astype(jnp.float32)

    # ---- cost hint --------------------------------------------------------------
    x_reads = 1 if k_tiles == 1 else o_tiles
    w_reads = 1 if (k_tiles == 1 and o_tiles == 1) else batch_tiles
    cost = pl.CostEstimate(
        flops=2 * B_pad * D_pad * O_pad,
        transcendentals=0,
        bytes_accessed=(x_reads * B_pad * D_pad * x_it
                        + w_reads * D_pad * O_pad * w_it
                        + O_pad * 4
                        + B_pad * O_pad * out_it),
    )

    if k_tiles == 1:
        grid_spec = pltpu.PrefetchScalarGridSpec(
            num_scalar_prefetch=0,
            grid=(batch_tiles, o_tiles),
            in_specs=[
                pl.BlockSpec((tb, D_pad), lambda i, j: (i, 0)),   # x
                pl.BlockSpec((D_pad, to), lambda i, j: (0, j)),   # W (resident if o_tiles==1)
                pl.BlockSpec((1, to), lambda i, j: (0, j)),       # bias
            ],
            out_specs=pl.BlockSpec((tb, to), lambda i, j: (i, j)),
        )
        kernel = _head_kernel_single_k
        dims = ("parallel", "parallel")
    else:
        grid_spec = pltpu.PrefetchScalarGridSpec(
            num_scalar_prefetch=0,
            grid=(batch_tiles, o_tiles, k_tiles),
            in_specs=[
                pl.BlockSpec((tb, tk), lambda i, j, k: (i, k)),   # x
                pl.BlockSpec((tk, to), lambda i, j, k: (k, j)),   # W
                pl.BlockSpec((1, to), lambda i, j, k: (0, j)),    # bias
            ],
            out_specs=pl.BlockSpec((tb, to), lambda i, j, k: (i, j)),
            scratch_shapes=[pltpu.VMEM((tb, to), jnp.float32)],
        )
        kernel = _head_kernel_multi_k
        dims = ("parallel", "parallel", "arbitrary")

    out_padded = pl.pallas_call(
        kernel,
        out_shape=jax.ShapeDtypeStruct((B_pad, O_pad), out_dtype),
        grid_spec=grid_spec,
        compiler_params=pltpu.CompilerParams(
            dimension_semantics=dims,
            vmem_limit_bytes=int(vmem_limit_bytes),
        ),
        cost_estimate=cost,
    )(x_p, w_p, b2d)

    return out_padded[:B, :O]


if __name__ == "__main__":
    key = jax.random.PRNGKey(0)
    k_x, k_w, k_b, k_x2, k_w2, k_b2 = jax.random.split(key, 6)

    def ref_linear(xa, wa, ba):
        return lax.dot_general(xa, wa, (((1,), (1,)), ((), ())),
                               precision=lax.Precision.HIGHEST) + ba

    # Small shapes matching the module spec (ClassificationHead forward).
    batch, input_dim, out_dim = 2, 32, 8
    x = jax.random.normal(k_x, (batch, input_dim), dtype=jnp.float32)
    w = jax.random.normal(k_w, (out_dim, input_dim), dtype=jnp.float32) / jnp.sqrt(input_dim)
    b = 0.01 * jax.random.normal(k_b, (out_dim,), dtype=jnp.float32)
    ref = ref_linear(x, w, b)

    # 1) tiny problem -> automatic XLA bail-out (pallas overhead not worth one MXU op).
    out = classification_head(x, w, b)
    jax.block_until_ready(out)
    assert out.shape == (batch, out_dim)
    assert jnp.allclose(out, ref, atol=1e-2, rtol=1e-2), "XLA bail-out path mismatch"

    # 2) same tiny problem forced through the Pallas path (f32 compute).
    out_p = classification_head(x, w, b, compute_dtype=jnp.float32, force_pallas=True)
    jax.block_until_ready(out_p)
    assert out_p.shape == (batch, out_dim)
    assert jnp.allclose(out_p, ref, atol=1e-2, rtol=1e-2), "Pallas (f32, small) mismatch"

    # 3) a larger head exercising the resident-weight / batch-tiling logic.
    B2, D2, O2 = 256, 512, 384
    x2 = jax.random.normal(k_x2, (B2, D2), dtype=jnp.float32)
    w2 = jax.random.normal(k_w2, (O2, D2), dtype=jnp.float32) / jnp.sqrt(D2)
    b2 = 0.01 * jax.random.normal(k_b2, (O2,), dtype=jnp.float32)
    ref2 = ref_linear(x2, w2, b2)

    out2_f32 = classification_head(x2, w2, b2, compute_dtype=jnp.float32)
    jax.block_until_ready(out2_f32)
    assert out2_f32.shape == (B2, O2)
    assert jnp.allclose(out2_f32, ref2, atol=3e-2, rtol=3e-2), "Pallas (f32, large) mismatch"

    out2 = classification_head(x2, w2, b2)   # default: bf16 compute on v6e/v7x
    jax.block_until_ready(out2)
    assert out2.shape == (B2, O2)
    assert jnp.allclose(out2, ref2, atol=7e-2, rtol=7e-2), "Pallas (default, large) mismatch"

    print("KERNEL_OK")
</pallas_src>

<mosaic_0001>
module attributes {stable_mosaic.version = 11 : i64} {
  func.func @_head_kernel_single_k(%arg0: i32, %arg1: i32, %arg2: memref<8x128xf32, #tpu.memory_space<vmem>>, %arg3: memref<128x128xf32, #tpu.memory_space<vmem>>, %arg4: memref<1x128xf32, #tpu.memory_space<vmem>>, %arg5: memref<8x128xf32, #tpu.memory_space<vmem>>) attributes {dimension_semantics = [#tpu.dimension_semantics<parallel>, #tpu.dimension_semantics<parallel>], iteration_bounds = array<i64: 1, 1>, scalar_prefetch = 0 : i64, scratch_operands = 0 : i64, tpu.core_type = #tpu.core_type<tc>, window_params = [{transform_indices = @transform_0, window_bounds = array<i64: 8, 128>}, {transform_indices = @transform_1, window_bounds = array<i64: 128, 128>}, {transform_indices = @transform_2, window_bounds = array<i64: 1, 128>}, {transform_indices = @transform_3, window_bounds = array<i64: 8, 128>}]} {
    %c0 = arith.constant 0 : index
    %c0_0 = arith.constant 0 : index
    %0 = vector.load %arg2[%c0, %c0_0] : memref<8x128xf32, #tpu.memory_space<vmem>>, vector<8x128xf32>
    %c0_1 = arith.constant 0 : index
    %c0_2 = arith.constant 0 : index
    %1 = vector.load %arg3[%c0_1, %c0_2] : memref<128x128xf32, #tpu.memory_space<vmem>>, vector<128x128xf32>
    %cst = arith.constant dense<0.000000e+00> : vector<8x128xf32>
    %2 = tpu.matmul %0, %1, %cst {dimension_numbers = #tpu.dot_dimension_numbers<[1], [0], [0], [1], [0, 0, 1, 1], [], []>} : vector<8x128xf32>, vector<128x128xf32>, vector<8x128xf32> -> vector<8x128xf32>
    %c0_3 = arith.constant 0 : index
    %c0_4 = arith.constant 0 : index
    %3 = vector.load %arg4[%c0_3, %c0_4] : memref<1x128xf32, #tpu.memory_space<vmem>>, vector<1x128xf32>
    %4 = vector.broadcast %3 : vector<1x128xf32> to vector<8x128xf32>
    %5 = arith.addf %2, %4 : vector<8x128xf32>
    %c0_5 = arith.constant 0 : index
    %c0_6 = arith.constant 0 : index
    %6 = vector.load %arg5[%c0_5, %c0_6] : memref<8x128xf32, #tpu.memory_space<vmem>>, vector<8x128xf32>
    tpu.vector_store %arg5[%c0_5, %c0_6], %5 {strides = array<i32>} : memref<8x128xf32, #tpu.memory_space<vmem>>, vector<8x128xf32>,
    return
  }
  func.func @transform_0(%arg0: i32, %arg1: i32) -> (i32, i32) {
    %c0_i32 = arith.constant 0 : i32
    %c0_i32_0 = arith.constant 0 : i32
    return %arg0, %c0_i32 : i32, i32
  }
  func.func @transform_1(%arg0: i32, %arg1: i32) -> (i32, i32) {
    %c0_i32 = arith.constant 0 : i32
    %c0_i32_0 = arith.constant 0 : i32
    return %c0_i32, %arg1 : i32, i32
  }
  func.func @transform_2(%arg0: i32, %arg1: i32) -> (i32, i32) {
    %c0_i32 = arith.constant 0 : i32
    %c0_i32_0 = arith.constant 0 : i32
    return %c0_i32, %arg1 : i32, i32
  }
  func.func @transform_3(%arg0: i32, %arg1: i32) -> (i32, i32) {
    %c0_i32 = arith.constant 0 : i32
    return %arg0, %arg1 : i32, i32
  }
}

</mosaic_0001>

<bundles_post_ra>
// kernel: tpu_custom_call.1
= control target key start
LH: loop header
LB: loop body
LE: loop exit
PB: predicated region body
PF: predicated region fallthrough
CT: control target
= control target key end

     0   :  { %8 = vsyncpa [#allocation3], 0  ;;  %s317_s0 = inlined_call_operand.hbm [shape: f32[8,128], index: 0, kind: input, shape index: {}]   ;;  %s318_s1 = inlined_call_operand.hbm [shape: f32[128,128], index: 1, kind: input, shape index: {}]   ;;  %s319_s2 = inlined_call_operand.vmem [shape: f32[1,128], index: 2, kind: input, shape index: {}]   ;;  %s320_s3 = inlined_call_operand.hbm [shape: f32[8,128], index: 3, kind: output, shape index: {}]  }
   0x1   :  { %9 = vsyncpa [#allocation6], 0 }
   0x2   :  { %10 = vsyncpa [#allocation4], 0  ;;  %s278_s12 = smov [#allocation2]   ;;  %s279_s14 = smov [#allocation5]  }
   0x3   :  { %s17_s13 = sshll.u32 %s278_s12, 4  ;;  %s26_s15 = sshll.u32 %s279_s14, 4  ;;  %s18_s13 = int_to_ptr.vmem [resolvable:$true] %s17_s13  ;;  %s27_s15 = int_to_ptr.vmem [resolvable:$true] %s26_s15 }
   0x4   :  { %s220_s16 = scalar_lea.vmem %s18_s13, 128  ;;  %p225_p1 = scmp.lt.s32.totalorder %s18_s13, %s18_s13 }
   0x5   :  { %p221_p0 = scmp.ne.s32.totalorder %s18_s13, %s220_s16  ;;  %p226_p2 = scmp.lt.s32.totalorder %s220_s16, %s220_s16 }
   0x7   :  { %p227_p3 = por %p226_p2, %p225_p1 }
   0x9   :  { %p228_p4 = pnand %p227_p3, %p221_p0 }
   0xb   :  { %231 = shalt.err (!%p228_p4)
}
   0xc   :  { %20 = dma.hbm_to_vmem [thread:$0]  %s317_s0, 128, %s18_s13, [#allocation3]  }
   0xd   :  { %s240_s19 = scalar_lea.vmem %s27_s15, 2048  ;;  %p245_p6 = scmp.lt.s32.totalorder %s27_s15, %s27_s15 }
   0xe   :  { %p241_p5 = scmp.ne.s32.totalorder %s27_s15, %s240_s19  ;;  %p246_p7 = scmp.lt.s32.totalorder %s240_s19, %s240_s19 }
  0x10   :  { %p247_p8 = por %p246_p7, %p245_p6 }
  0x12   :  { %p248_p9 = pnand %p247_p8, %p241_p5 }
  0x14   :  { %251 = shalt.err (!%p248_p9)
}
  0x15   :  { %s280_s20 = smov 128   ;;  %s281_s21 = smov 8  }
  0x16   :  { %32 = dma.hbm_to_vmem [thread:$0]  %s318_s1, 2048, %s27_s15, [#allocation6], %s280_s20, %s280_s20, %s281_s21  }
  0x17   :  { %272 = dma.done.wait [#allocation3], 128  }
  0x18   :  { %273 = vsyncadd [#allocation3], 4294967168 }
  0x19   :  { %274 = dma.done.wait [#allocation6], 2048  }
  0x1a   :  { %275 = vsyncadd [#allocation6], 4294965248  ;;  %v282_v0 = vmov 0.0   ;;  %vm283_vm0 = vmmov 0   ;;  %v57_v1 = vld [vmem:[#allocation5 + $0x78] sm:$0xff]  ;;  %v56_v2 = vld [vmem:[#allocation5 + $0x70] sm:$0xff] }
  0x1b   :  { %170 = vmatprep.subr.mxu0 %v282_v0  ;;  %202 = vmatprep.mubr.msk.f32.mxu0 %vm283_vm0, %v282_v0  ;;  %v55_v3 = vld [vmem:[#allocation5 + $0x68] sm:$0xff]  ;;  %v54_v4 = vld [vmem:[#allocation5 + $0x60] sm:$0xff]  ;;  %v53_v5 = vld [vmem:[#allocation5 + $0x58] sm:$0xff]  ;;  %s284_s24 = smov [#allocation7]  }
  0x1c   :  { %171 = vmatpush3.msra.mxu0 %v57_v1  ;;  %v52_v6 = vld [vmem:[#allocation5 + $0x50] sm:$0xff]  ;;  %v51_v7 = vld [vmem:[#allocation5 + $0x48] sm:$0xff]  ;;  %v50_v8 = vld [vmem:[#allocation5 + $0x40] sm:$0xff]  ;;  %s142_s25 = sshll.u32 %s284_s24, 4  ;;  %s143_s25 = int_to_ptr.vmem [resolvable:$true] %s142_s25 }
  0x1d   :  { %172 = vmatprep.subr.mxu0 %v282_v0  ;;  %v49_v9 = vld [vmem:[#allocation5 + $0x38] sm:$0xff]  ;;  %v48_v10 = vld [vmem:[#allocation5 + $0x30] sm:$0xff]  ;;  %v47_v11 = vld [vmem:[#allocation5 + $0x28] sm:$0xff]  ;;  %s252_s26 = scalar_lea.vmem %s143_s25, 128  ;;  %p257_p11 = scmp.lt.s32.totalorder %s143_s25, %s143_s25 }
  0x1e   :  { %173 = vmatpush3.msra.mxu0 %v56_v2  ;;  %v46_v12 = vld [vmem:[#allocation5 + $0x20] sm:$0xff]  ;;  %v45_v13 = vld [vmem:[#allocation5 + $0x18] sm:$0xff]  ;;  %v44_v14 = vld [vmem:[#allocation5 + $0x10] sm:$0xff]  ;;  %p253_p10 = scmp.ne.s32.totalorder %s143_s25, %s252_s26  ;;  %p258_p12 = scmp.lt.s32.totalorder %s252_s26, %s252_s26 }
  0x1f   :  { %174 = vmatprep.subr.mxu0 %v282_v0  ;;  %v43_v15 = vld [vmem:[#allocation5 + $0x8] sm:$0xff]  ;;  %v42_v16 = vld [vmem:[#allocation5] sm:$0xff]  ;;  %v41_v17 = vld [vmem:[#allocation2] sm:$0xff] }
  0x20   :  { %175 = vmatpush3.msra.mxu0 %v55_v3  ;;  %v152_v18 = vld [vmem:[%s319_s2] ss:$0 sm:$0xff]  ;;  %p259_p13 = por %p258_p12, %p257_p11 }
  0x21   :  { %176 = vmatprep.subr.mxu0 %v282_v0 }
  0x22   :  { %177 = vmatpush3.msra.mxu0 %v54_v4  ;;  %p260_p0 = pnand %p259_p13, %p253_p10 }
  0x23   :  { %178 = vmatprep.subr.mxu0 %v282_v0 }
  0x24   :  { %179 = vmatpush3.msra.mxu0 %v53_v5 }
  0x25   :  { %180 = vmatprep.subr.mxu0 %v282_v0 }
  0x26   :  { %181 = vmatpush3.msra.mxu0 %v52_v6 }
  0x27   :  { %182 = vmatprep.subr.mxu0 %v282_v0 }
  0x28   :  { %183 = vmatpush3.msra.mxu0 %v51_v7 }
  0x29   :  { %184 = vmatprep.subr.mxu0 %v282_v0 }
  0x2a   :  { %185 = vmatpush3.msra.mxu0 %v50_v8 }
  0x2b   :  { %186 = vmatprep.subr.mxu0 %v282_v0 }
  0x2c   :  { %187 = vmatpush3.msra.mxu0 %v49_v9 }
  0x2d   :  { %188 = vmatprep.subr.mxu0 %v282_v0 }
  0x2e   :  { %189 = vmatpush3.msra.mxu0 %v48_v10 }
  0x2f   :  { %190 = vmatprep.subr.mxu0 %v282_v0 }
  0x30   :  { %191 = vmatpush3.msra.mxu0 %v47_v11 }
  0x31   :  { %192 = vmatprep.subr.mxu0 %v282_v0 }
  0x32   :  { %193 = vmatpush3.msra.mxu0 %v46_v12 }
  0x33   :  { %194 = vmatprep.subr.mxu0 %v282_v0 }
  0x34   :  { %195 = vmatpush3.msra.mxu0 %v45_v13 }
  0x35   :  { %196 = vmatprep.subr.mxu0 %v282_v0 }
  0x36   :  { %197 = vmatpush3.msra.mxu0 %v44_v14 }
  0x37   :  { %198 = vmatprep.subr.mxu0 %v282_v0 }
  0x38   :  { %199 = vmatpush3.msra.mxu0 %v43_v15 }
  0x39   :  { %200 = vmatprep.subr.mxu0 %v282_v0 }
  0x3a   :  { %201 = vmatpush3.msra.mxu0 %v42_v16 }
  0x3b   :  { %203 = vmatmul.mubr.f32.vlgmr.msra.gmra.mxu0 %v41_v17 }
  0xfb   :  { %v131_v19 = vpop.f32.mrf.mxu0 }
  0xfc   :  { %v132_v20 = vadd.f32 %v152_v18, %v131_v19 }
  0xfd   :  { %v204_v21 = vpop.f32.mrf.mxu0 }
  0xfe   :  { %135 = vst [vmem:[#allocation7] sm:$0xff] %v132_v20 }
  0xff   :  { %263 = shalt.err (!%p260_p0)
}
 0x100   :  { %145 = dma.vmem_to_hbm [thread:$0]  %s143_s25, 128, %s320_s3, [#allocation4]  }
 0x101   :  { %276 = dma.done.wait [#allocation4], 128  }
 0x102   :  { %277 = vsyncadd [#allocation4], 4294967168 }
 0x103   :  { %149 = vsyncpa [#allocation3], 1 }
 0x104   :  { %150 = vsyncpa [#allocation6], 1 }
 0x105   :  { %151 = vsyncpa [#allocation4], 1 }

</bundles_post_ra>
